<compile_context>
chip_gen: v5e
topology: v5e:2x2
jax: 0.10.0
libtpu: 0.0.40
codegen_flags: <defaults>
</compile_context>

<pallas_src>
import jax
import jax.numpy as jnp
from jax.experimental import pallas as pl
from jax.experimental.pallas import tpu as pltpu


def mlp_kernel(x_ref, w1_ref, b1_ref, w2_ref, b2_ref, w3_ref, b3_ref, o_ref):
    # Whole hot path (3 matmuls + biases + ReLUs) runs on-chip per batch tile.
    # Weights are pre-transposed to (in, out); compute dtype follows the
    # weight dtype (f32 or bf16), accumulation is always f32 on the MXU.
    cd = w1_ref.dtype
    x = x_ref[...].astype(cd)
    h1 = jnp.dot(x, w1_ref[...], preferred_element_type=jnp.float32) + b1_ref[...]
    h1 = jnp.maximum(h1, 0.0).astype(cd)
    h2 = jnp.dot(h1, w2_ref[...], preferred_element_type=jnp.float32) + b2_ref[...]
    h2 = jnp.maximum(h2, 0.0).astype(cd)
    out = jnp.dot(h2, w3_ref[...], preferred_element_type=jnp.float32) + b3_ref[...]
    o_ref[...] = out.astype(o_ref.dtype)


def _round_up(n, m):
    return ((n + m - 1) // m) * m


def prepare_params(params, compute_dtype=jnp.float32):
    """One-time, hoisted param prep: transpose weights to (in, out), reshape
    biases to (1, dim), optionally cast weights to bf16 for the MXU.
    `params` uses PyTorch nn.Linear shapes: w (out, in), b (out,)."""
    return {
        "w1t": jnp.asarray(params["w1"]).T.astype(compute_dtype),   # (D, H)
        "w2t": jnp.asarray(params["w2"]).T.astype(compute_dtype),   # (H, H)
        "w3t": jnp.asarray(params["w3"]).T.astype(compute_dtype),   # (H, O)
        "b1": jnp.asarray(params["b1"]).reshape(1, -1).astype(jnp.float32),
        "b2": jnp.asarray(params["b2"]).reshape(1, -1).astype(jnp.float32),
        "b3": jnp.asarray(params["b3"]).reshape(1, -1).astype(jnp.float32),
    }


def classifier_net_forward(x, params, *, batch_tile=None):
    """x: [B, common_rep_dim] float32.
    params: either a raw PyTorch-style dict (w1,b1,w2,b2,w3,b3) or the
    kernel-ready pytree returned by prepare_params()."""
    if "w1t" not in params:
        params = prepare_params(params)  # fallback; prefer hoisting this.
    w1t, b1 = params["w1t"], params["b1"]
    w2t, b2 = params["w2t"], params["b2"]
    w3t, b3 = params["w3t"], params["b3"]

    B, D = x.shape
    H = w1t.shape[1]
    O = w3t.shape[1]

    # ---- batch tiling ------------------------------------------------------
    if batch_tile is None:
        bm = min(2048, _round_up(B, 8))          # big tile; small-batch fallback
        if B > 8:
            # Keep at least 2 grid steps so the "parallel" batch axis can
            # shard across both TensorCores on v7x.
            bm = min(bm, _round_up(pl.cdiv(B, 2), 8))
    else:
        bm = _round_up(int(batch_tile), 8)
    bm = max(bm, 8)
    grid = (pl.cdiv(B, bm),)                     # ragged tail handled by Pallas

    # ---- scheduling hints ---------------------------------------------------
    w_bytes = (
        (w1t.size + w2t.size + w3t.size) * w1t.dtype.itemsize
        + (b1.size + b2.size + b3.size) * 4
    )
    flops = 2 * B * (D * H + H * H + H * O)
    bytes_accessed = x.size * x.dtype.itemsize + B * O * 4 + w_bytes
    cost = pl.CostEstimate(
        flops=flops, transcendentals=0, bytes_accessed=bytes_accessed
    )

    # Double-buffered x / out tiles + resident weights; explicit limit is
    # insurance for v5e's 16 MiB default scoped VMEM when bm is pushed large.
    tile_bytes = 2 * (bm * D * x.dtype.itemsize + bm * O * 4) + 2 * w_bytes
    vmem_limit = int(min(64 * 1024 * 1024, max(32 * 1024 * 1024, 2 * tile_bytes)))

    out = pl.pallas_call(
        mlp_kernel,
        out_shape=jax.ShapeDtypeStruct((B, O), x.dtype),
        grid_spec=pltpu.PrefetchScalarGridSpec(
            num_scalar_prefetch=0,
            grid=grid,
            in_specs=[
                pl.BlockSpec((bm, D), lambda i: (i, 0)),   # x tile (pipelined)
                pl.BlockSpec((D, H), lambda i: (0, 0)),    # w1^T (grid-invariant)
                pl.BlockSpec((1, H), lambda i: (0, 0)),    # b1
                pl.BlockSpec((H, H), lambda i: (0, 0)),    # w2^T
                pl.BlockSpec((1, H), lambda i: (0, 0)),    # b2
                pl.BlockSpec((H, O), lambda i: (0, 0)),    # w3^T (real O, no pad)
                pl.BlockSpec((1, O), lambda i: (0, 0)),    # b3
            ],
            out_specs=pl.BlockSpec((bm, O), lambda i: (i, 0)),
        ),
        compiler_params=pltpu.CompilerParams(
            dimension_semantics=("parallel",),
            vmem_limit_bytes=vmem_limit,
        ),
        cost_estimate=cost,
    )(x, w1t, b1, w2t, b2, w3t, b3)
    return out


def init_params(key, common_rep_dim, hidden_1, output_dim):
    """Deterministic synthetic parameters with nn.Linear-style shapes."""
    ks = jax.random.split(key, 6)

    def linear_init(kw, kb, out_f, in_f):
        # Mimic PyTorch's U(-1/sqrt(in), 1/sqrt(in)) init deterministically.
        bound = 1.0 / jnp.sqrt(jnp.float32(in_f))
        w = jax.random.uniform(kw, (out_f, in_f), jnp.float32, -bound, bound)
        b = jax.random.uniform(kb, (out_f,), jnp.float32, -bound, bound)
        return w, b

    w1, b1 = linear_init(ks[0], ks[1], hidden_1, common_rep_dim)
    w2, b2 = linear_init(ks[2], ks[3], hidden_1, hidden_1)
    w3, b3 = linear_init(ks[4], ks[5], output_dim, hidden_1)
    return {"w1": w1, "b1": b1, "w2": w2, "b2": b2, "w3": w3, "b3": b3}


def reference_forward(x, p):
    h1 = jnp.maximum(x @ p["w1"].T + p["b1"], 0.0)
    h2 = jnp.maximum(h1 @ p["w2"].T + p["b2"], 0.0)
    return h2 @ p["w3"].T + p["b3"]


if __name__ == "__main__":
    key = jax.random.PRNGKey(0)
    k_x, k_p, k_x2, k_x3 = jax.random.split(key, 4)

    common_rep_dim, hidden_1, output_dim = 32, 32, 10
    raw_params = init_params(k_p, common_rep_dim, hidden_1, output_dim)

    fwd = jax.jit(classifier_net_forward, static_argnames=("batch_tile",))

    # ---- f32 path (exact semantics of the PyTorch module) ------------------
    prepared_f32 = prepare_params(raw_params, jnp.float32)   # hoisted, once

    x = jax.random.normal(k_x, (8, common_rep_dim), jnp.float32)
    out = jax.block_until_ready(fwd(x, prepared_f32))
    ref = reference_forward(x, raw_params)
    assert out.shape == (8, output_dim)
    assert jnp.allclose(out, ref, atol=1e-5, rtol=1e-5)

    # Ragged batch: B=200 auto-tiles to bm=104 -> 2 grid steps (one per TC on
    # v7x) with a masked tail store; no host-side padding or trailing slice.
    x2 = jax.random.normal(k_x2, (200, common_rep_dim), jnp.float32)
    out2 = jax.block_until_ready(fwd(x2, prepared_f32))
    ref2 = reference_forward(x2, raw_params)
    assert out2.shape == (200, output_dim)
    assert jnp.allclose(out2, ref2, atol=1e-5, rtol=1e-5)

    # Explicit small batch_tile exercises a multi-step pipelined grid.
    out2b = jax.block_until_ready(fwd(x2, prepared_f32, batch_tile=64))
    assert jnp.allclose(out2b, ref2, atol=1e-5, rtol=1e-5)

    # ---- optional bf16 compute path (MXU-native; looser tolerance) ---------
    prepared_bf16 = prepare_params(raw_params, jnp.bfloat16)
    x3 = jax.random.normal(k_x3, (64, common_rep_dim), jnp.float32)
    out3 = jax.block_until_ready(fwd(x3, prepared_bf16))
    ref3 = reference_forward(x3, raw_params)
    assert out3.shape == (64, output_dim)
    assert jnp.allclose(out3, ref3, atol=5e-2, rtol=5e-2)

    print("KERNEL_OK")
</pallas_src>

<mosaic_0001>
module attributes {stable_mosaic.version = 11 : i64} {
  func.func @mlp_kernel(%arg0: i32, %arg1: memref<8x32xf32, #tpu.memory_space<vmem>>, %arg2: memref<32x32xf32, #tpu.memory_space<vmem>>, %arg3: memref<1x32xf32, #tpu.memory_space<vmem>>, %arg4: memref<32x32xf32, #tpu.memory_space<vmem>>, %arg5: memref<1x32xf32, #tpu.memory_space<vmem>>, %arg6: memref<32x10xf32, #tpu.memory_space<vmem>>, %arg7: memref<1x10xf32, #tpu.memory_space<vmem>>, %arg8: memref<8x10xf32, #tpu.memory_space<vmem>>) attributes {dimension_semantics = [#tpu.dimension_semantics<parallel>], iteration_bounds = array<i64: 1>, scalar_prefetch = 0 : i64, scratch_operands = 0 : i64, tpu.core_type = #tpu.core_type<tc>, window_params = [{transform_indices = @transform_0, window_bounds = array<i64: 8, 32>}, {pipeline_mode = #tpu.pipeline_mode<synchronous>, transform_indices = @transform_1, window_bounds = array<i64: 32, 32>}, {pipeline_mode = #tpu.pipeline_mode<synchronous>, transform_indices = @transform_2, window_bounds = array<i64: 1, 32>}, {pipeline_mode = #tpu.pipeline_mode<synchronous>, transform_indices = @transform_3, window_bounds = array<i64: 32, 32>}, {pipeline_mode = #tpu.pipeline_mode<synchronous>, transform_indices = @transform_4, window_bounds = array<i64: 1, 32>}, {pipeline_mode = #tpu.pipeline_mode<synchronous>, transform_indices = @transform_5, window_bounds = array<i64: 32, 10>}, {pipeline_mode = #tpu.pipeline_mode<synchronous>, transform_indices = @transform_6, window_bounds = array<i64: 1, 10>}, {transform_indices = @transform_7, window_bounds = array<i64: 8, 10>}]} {
    %c0 = arith.constant 0 : index
    %c0_0 = arith.constant 0 : index
    %0 = vector.load %arg1[%c0, %c0_0] : memref<8x32xf32, #tpu.memory_space<vmem>>, vector<8x32xf32>
    %c0_1 = arith.constant 0 : index
    %c0_2 = arith.constant 0 : index
    %1 = vector.load %arg2[%c0_1, %c0_2] : memref<32x32xf32, #tpu.memory_space<vmem>>, vector<32x32xf32>
    %cst = arith.constant dense<0.000000e+00> : vector<8x32xf32>
    %2 = tpu.matmul %0, %1, %cst {dimension_numbers = #tpu.dot_dimension_numbers<[1], [0], [0], [1], [0, 0, 1, 1], [], []>} : vector<8x32xf32>, vector<32x32xf32>, vector<8x32xf32> -> vector<8x32xf32>
    %c0_3 = arith.constant 0 : index
    %c0_4 = arith.constant 0 : index
    %3 = vector.load %arg3[%c0_3, %c0_4] : memref<1x32xf32, #tpu.memory_space<vmem>>, vector<1x32xf32>
    %4 = vector.broadcast %3 : vector<1x32xf32> to vector<8x32xf32>
    %5 = arith.addf %2, %4 : vector<8x32xf32>
    %cst_5 = arith.constant 0.000000e+00 : f32
    %6 = vector.broadcast %cst_5 : f32 to vector<8x32xf32>
    %7 = arith.maximumf %5, %6 : vector<8x32xf32>
    %c0_6 = arith.constant 0 : index
    %c0_7 = arith.constant 0 : index
    %8 = vector.load %arg4[%c0_6, %c0_7] : memref<32x32xf32, #tpu.memory_space<vmem>>, vector<32x32xf32>
    %cst_8 = arith.constant dense<0.000000e+00> : vector<8x32xf32>
    %9 = tpu.matmul %7, %8, %cst_8 {dimension_numbers = #tpu.dot_dimension_numbers<[1], [0], [0], [1], [0, 0, 1, 1], [], []>} : vector<8x32xf32>, vector<32x32xf32>, vector<8x32xf32> -> vector<8x32xf32>
    %c0_9 = arith.constant 0 : index
    %c0_10 = arith.constant 0 : index
    %10 = vector.load %arg5[%c0_9, %c0_10] : memref<1x32xf32, #tpu.memory_space<vmem>>, vector<1x32xf32>
    %11 = vector.broadcast %10 : vector<1x32xf32> to vector<8x32xf32>
    %12 = arith.addf %9, %11 : vector<8x32xf32>
    %cst_11 = arith.constant 0.000000e+00 : f32
    %13 = vector.broadcast %cst_11 : f32 to vector<8x32xf32>
    %14 = arith.maximumf %12, %13 : vector<8x32xf32>
    %c0_12 = arith.constant 0 : index
    %c0_13 = arith.constant 0 : index
    %15 = vector.load %arg6[%c0_12, %c0_13] : memref<32x10xf32, #tpu.memory_space<vmem>>, vector<32x10xf32>
    %cst_14 = arith.constant dense<0.000000e+00> : vector<8x10xf32>
    %16 = tpu.matmul %14, %15, %cst_14 {dimension_numbers = #tpu.dot_dimension_numbers<[1], [0], [0], [1], [0, 0, 1, 1], [], []>} : vector<8x32xf32>, vector<32x10xf32>, vector<8x10xf32> -> vector<8x10xf32>
    %c0_15 = arith.constant 0 : index
    %c0_16 = arith.constant 0 : index
    %17 = vector.load %arg7[%c0_15, %c0_16] : memref<1x10xf32, #tpu.memory_space<vmem>>, vector<1x10xf32>
    %18 = vector.broadcast %17 : vector<1x10xf32> to vector<8x10xf32>
    %19 = arith.addf %16, %18 : vector<8x10xf32>
    %c0_17 = arith.constant 0 : index
    %c0_18 = arith.constant 0 : index
    %20 = vector.load %arg8[%c0_17, %c0_18] : memref<8x10xf32, #tpu.memory_space<vmem>>, vector<8x10xf32>
    tpu.vector_store %arg8[%c0_17, %c0_18], %19 {strides = array<i32>} : memref<8x10xf32, #tpu.memory_space<vmem>>, vector<8x10xf32>,
    return
  }
  func.func @transform_0(%arg0: i32) -> (i32, i32) {
    %c0_i32 = arith.constant 0 : i32
    %c0_i32_0 = arith.constant 0 : i32
    return %arg0, %c0_i32 : i32, i32
  }
  func.func @transform_1(%arg0: i32) -> (i32, i32) {
    %c0_i32 = arith.constant 0 : i32
    %c0_i32_0 = arith.constant 0 : i32
    %c0_i32_1 = arith.constant 0 : i32
    return %c0_i32, %c0_i32_0 : i32, i32
  }
  func.func @transform_2(%arg0: i32) -> (i32, i32) {
    %c0_i32 = arith.constant 0 : i32
    %c0_i32_0 = arith.constant 0 : i32
    %c0_i32_1 = arith.constant 0 : i32
    return %c0_i32, %c0_i32_0 : i32, i32
  }
  func.func @transform_3(%arg0: i32) -> (i32, i32) {
    %c0_i32 = arith.constant 0 : i32
    %c0_i32_0 = arith.constant 0 : i32
    %c0_i32_1 = arith.constant 0 : i32
    return %c0_i32, %c0_i32_0 : i32, i32
  }
  func.func @transform_4(%arg0: i32) -> (i32, i32) {
    %c0_i32 = arith.constant 0 : i32
    %c0_i32_0 = arith.constant 0 : i32
    %c0_i32_1 = arith.constant 0 : i32
    return %c0_i32, %c0_i32_0 : i32, i32
  }
  func.func @transform_5(%arg0: i32) -> (i32, i32) {
    %c0_i32 = arith.constant 0 : i32
    %c0_i32_0 = arith.constant 0 : i32
    %c0_i32_1 = arith.constant 0 : i32
    return %c0_i32, %c0_i32_0 : i32, i32
  }
  func.func @transform_6(%arg0: i32) -> (i32, i32) {
    %c0_i32 = arith.constant 0 : i32
    %c0_i32_0 = arith.constant 0 : i32
    %c0_i32_1 = arith.constant 0 : i32
    return %c0_i32, %c0_i32_0 : i32, i32
  }
  func.func @transform_7(%arg0: i32) -> (i32, i32) {
    %c0_i32 = arith.constant 0 : i32
    %c0_i32_0 = arith.constant 0 : i32
    return %arg0, %c0_i32 : i32, i32
  }
}

</mosaic_0001>

<bundles_post_ra>
// kernel: classifier_net_forward.1
= control target key start
LH: loop header
LB: loop body
LE: loop exit
PB: predicated region body
PF: predicated region fallthrough
CT: control target
= control target key end

     0   :  { %12 = vsyncpa [#allocation3], 0  ;;  %s310_s0 = inlined_call_operand.vmem [shape: f32[8,32], index: 0, kind: input, shape index: {}]   ;;  %s311_s1 = inlined_call_operand.vmem [shape: f32[32,32], index: 1, kind: input, shape index: {}]   ;;  %s312_s2 = inlined_call_operand.vmem [shape: f32[1,32], index: 2, kind: input, shape index: {}]   ;;  %s313_s3 = inlined_call_operand.hbm [shape: f32[32,32], index: 3, kind: input, shape index: {}]   ;;  %s314_s4 = inlined_call_operand.vmem [shape: f32[1,32], index: 4, kind: input, shape index: {}]   ;;  %s315_s5 = inlined_call_operand.vmem [shape: f32[32,10], index: 5, kind: input, shape index: {}]   ;;  %s316_s6 = inlined_call_operand.vmem [shape: f32[1,10], index: 6, kind: input, shape index: {}]   ;;  %s317_s7 = inlined_call_operand.hbm [shape: f32[8,10], index: 7, kind: output, shape index: {}]  }
   0x1   :  { %13 = vsyncpa [#allocation4], 0  ;;  %s24_s26 = sshll.u32 %s313_s3, 4  ;;  %s221_s27 = smov [#allocation2]   ;;  %s25_s26 = int_to_ptr.hbm [resolvable:$true] %s24_s26 }
   0x2   :  { %s26_s28 = sshll.u32 %s221_s27, 4  ;;  %s222_s29 = smov 128   ;;  %s27_s28 = int_to_ptr.vmem [resolvable:$true] %s26_s28 }
   0x3   :  { %s223_s30 = smov 8  }
   0x4   :  { %32 = dma.hbm_to_vmem [thread:$0]  %s25_s26, 512, %s27_s28, [#allocation3], %s222_s29, %s222_s29, %s223_s30  }
   0x5   :  { %217 = dma.done.wait [#allocation3], 512  }
   0x6   :  { %218 = vsyncadd [#allocation3], 4294966784  ;;  %v47_v0 = vld [vmem:[%s311_s1 + $0x18] sm:$0xff]  ;;  %v46_v1 = vld [vmem:[%s311_s1 + $0x10] sm:$0xff]  ;;  %vm52_vm0 = vcmask 261120   ;;  %s224_s28 = smov [#allocation5]  }
   0x7   :  { %68 = vmatpush.msra.mxu0 %v47_v0  ;;  %v80_v2 = vld [vmem:[#allocation2 + $0x18] sm:$0xff]  ;;  %v45_v3 = vld [vmem:[%s311_s1 + $0x8] sm:$0xff]  ;;  %v44_v4 = vld [vmem:[%s311_s1] sm:$0xff]  ;;  %s147_s29 = sshll.u32 %s224_s28, 4  ;;  %vm140_vm1 = vcmask 80896   ;;  %s148_s29 = int_to_ptr.vmem [resolvable:$true] %s147_s29 }
   0x8   :  { %100 = vmatpush.msra.mxu1 %v80_v2  ;;  %v43_v5 = vld [vmem:[%s310_s0] sm:$0xff]  ;;  %v79_v6 = vld [vmem:[#allocation2 + $0x10] sm:$0xff]  ;;  %v78_v7 = vld [vmem:[#allocation2 + $0x8] sm:$0xff] }
   0x9   :  { %69 = vmatpush.msra.mxu0 %v46_v1  ;;  %v77_v8 = vld [vmem:[#allocation2] sm:$0xff]  ;;  %v112_v9 = vld [vmem:[%s315_s5 + $0x18] sm:$0xff]  ;;  %v111_v14 = vld [vmem:[%s315_s5 + $0x10] sm:$0xff] }
   0xa   :  { %101 = vmatpush.msra.mxu1 %v79_v6  ;;  %132 = vmatpush.msra.mxu2 %v112_v9  ;;  %v166_v10 = vld [vmem:[%s312_s2] ss:$0 sm:$0xff]  ;;  %v110_v15 = vld [vmem:[%s315_s5 + $0x8] sm:$0xff] }
   0xb   :  { %70 = vmatpush.msra.mxu0 %v45_v3  ;;  %v109_v16 = vld [vmem:[%s315_s5] sm:$0xff]  ;;  %s149_s5 = sshll.u32 %s317_s7, 4  ;;  %s150_s5 = int_to_ptr.hbm [resolvable:$true] %s149_s5 }
   0xc   :  { %102 = vmatpush.msra.mxu1 %v78_v7  ;;  %133 = vmatpush.msra.mxu2 %v111_v14  ;;  %v167_v17 = vld [vmem:[%s314_s4] ss:$0 sm:$0xff] }
   0xd   :  { %71 = vmatpush.msra.mxu0 %v44_v4  ;;  %v168_v21 = vld [vmem:[%s316_s6] ss:$0 sm:$0xff] }
   0xe   :  { %159 = vmatmul.msk.f32.vlgmr.msra.gmra.mxu0 %vm52_vm0, %v43_v5  ;;  %103 = vmatpush.msra.mxu1 %v77_v8 }
   0xf   :  { %134 = vmatpush.msra.mxu2 %v110_v15 }
  0x11   :  { %135 = vmatpush.msra.mxu2 %v109_v16 }
  0x8b   :  { %v73_v11 = vpop.f32.mrf.mxu0 }
  0x8c   :  { %v74_v12 = vadd.f32 %v166_v10, %v73_v11 }
  0x8e   :  { %v76_v13 = vmax.f32 %v74_v12, 0.0 }
  0x90   :  { %160 = vmatmul.msk.f32.vlgmr.msra.gmra.mxu1 %vm52_vm0, %v76_v13 }
 0x10d   :  { %v105_v18 = vpop.f32.mrf.mxu1 }
 0x10e   :  { %v106_v19 = vadd.f32 %v167_v17, %v105_v18 }
 0x110   :  { %v108_v20 = vmax.f32 %v106_v19, 0.0 }
 0x112   :  { %161 = vmatmul.msk.f32.vlgmr.msra.gmra.mxu2 %vm52_vm0, %v108_v20 }
 0x195   :  { %v137_v22 = vpop.f32.mrf.mxu2 }
 0x196   :  { %v138_v23 = vadd.f32 %v168_v21, %v137_v22 }
 0x198   :  { %141 = vst.msk [vmem:[#allocation5] sm:$0xff] %vm140_vm1, %v138_v23 }
 0x199   :  { %152 = dma.vmem_to_hbm [thread:$0]  %s148_s29, 128, %s150_s5, [#allocation4]  }
 0x19a   :  { %219 = dma.done.wait [#allocation4], 128  }
 0x19b   :  { %220 = vsyncadd [#allocation4], 4294967168 }
 0x19c   :  { %157 = vsyncpa [#allocation3], 1 }
 0x19d   :  { %158 = vsyncpa [#allocation4], 1 }

</bundles_post_ra>
